<compile_context>
chip_gen: v7x
topology: tpu7x:2x2x1
jax: 0.10.0
libtpu: 0.0.40
codegen_flags: <defaults>
</compile_context>

<pallas_src>
import functools

import jax
import jax.numpy as jnp
from jax.experimental import pallas as pl
from jax.experimental.pallas import tpu as pltpu

LANE = 128  # TPU lane width


def dqn_kernel(x_ref, w1_ref, b1_ref, w2_ref, b2_ref, o_ref):
    x = x_ref[...]                      # (TB, D_in) f32
    d_in = x_ref.shape[1]               # small static python int (e.g. 4)

    # fc1 on the VPU: tiny-K contraction as an unrolled broadcast-FMA.
    # (TB,1) * (1,H) broadcasts across lanes; the loop is fully unrolled at
    # trace time, so it is just d_in fused multiply-adds per output vreg.
    acc = x[:, 0:1] * w1_ref[0:1, :]
    for k in range(1, d_in):
        acc = acc + x[:, k:k + 1] * w1_ref[k:k + 1, :]
    h = jnp.maximum(acc + b1_ref[...], 0.0)          # bias + ReLU in f32 (VPU)

    # fc2 on the MXU: bf16 inputs, f32 accumulate; output is lane-dense
    # because A was padded to 128 in the wrapper.
    out = jnp.dot(h.astype(jnp.bfloat16), w2_ref[...],
                  preferred_element_type=jnp.float32)
    o_ref[...] = (out + b2_ref[...]).astype(o_ref.dtype)


def prepare_params(w1, b1, w2, b2):
    """Pack params for the kernel: bf16 w2 (native MXU input dtype, half the
    VMEM/DMA footprint) and lane-pad the fc2 output dim to a multiple of 128
    so the kernel's output stores are unmasked/lane-dense."""
    H, A = w2.shape
    a_pad = max(LANE, -(-A // LANE) * LANE)
    w2_pad = jnp.zeros((H, a_pad), jnp.bfloat16).at[:, :A].set(
        w2.astype(jnp.bfloat16))
    b2_pad = jnp.zeros((1, a_pad), jnp.float32).at[:, :A].set(
        b2.astype(jnp.float32))
    return w1.astype(jnp.float32), b1.astype(jnp.float32), w2_pad, b2_pad, A


@functools.partial(jax.jit, static_argnames=("n_actions", "tb"))
def linear_dqn_forward(state, w1, b1, w2_pad, b2_pad, *, n_actions, tb=256):
    """state: (B, D_in) f32; w1: (D_in, H) f32; b1: (1, H) f32;
    w2_pad: (H, A_pad) bf16; b2_pad: (1, A_pad) f32.
    Returns (B, n_actions) f32."""
    B, D_in = state.shape
    H = w1.shape[1]
    A_pad = w2_pad.shape[1]

    # Pad batch to a sublane multiple; tile it on the grid only if it exceeds
    # `tb` (small batches -> single grid step -> minimal per-step overhead).
    B_pad = -(-B // 8) * 8
    if B_pad > tb:
        B_pad = -(-B_pad // tb) * tb
        block_b = tb
    else:
        block_b = B_pad
    if B_pad != B:
        state = jnp.pad(state, ((0, B_pad - B), (0, 0)))

    out = pl.pallas_call(
        dqn_kernel,
        out_shape=jax.ShapeDtypeStruct((B_pad, A_pad), jnp.float32),
        grid=(B_pad // block_b,),
        in_specs=[
            # Per-tile batch slab.
            pl.BlockSpec((block_b, D_in), lambda i: (i, 0)),
            # Weights/biases: constant block index -> fetched once, resident
            # in VMEM across all grid steps.
            pl.BlockSpec((D_in, H), lambda i: (0, 0)),
            pl.BlockSpec((1, H), lambda i: (0, 0)),
            pl.BlockSpec((H, A_pad), lambda i: (0, 0)),
            pl.BlockSpec((1, A_pad), lambda i: (0, 0)),
        ],
        out_specs=pl.BlockSpec((block_b, A_pad), lambda i: (i, 0)),
        compiler_params=pltpu.CompilerParams(
            dimension_semantics=("parallel",)),  # v7x: shard tiles over 2 TCs
    )(state, w1, b1, w2_pad, b2_pad)
    return out[:B, :n_actions]


def init_params(key, input_dims, hidden, n_actions):
    """Deterministic init mirroring nn.Linear's uniform(-1/sqrt(fan_in), +)."""
    k1, k2, k3, k4 = jax.random.split(key, 4)
    bound1 = 1.0 / jnp.sqrt(jnp.float32(input_dims))
    bound2 = 1.0 / jnp.sqrt(jnp.float32(hidden))
    w1 = jax.random.uniform(k1, (input_dims, hidden), jnp.float32, -bound1, bound1)
    b1 = jax.random.uniform(k2, (1, hidden), jnp.float32, -bound1, bound1)
    w2 = jax.random.uniform(k3, (hidden, n_actions), jnp.float32, -bound2, bound2)
    b2 = jax.random.uniform(k4, (1, n_actions), jnp.float32, -bound2, bound2)
    return w1, b1, w2, b2


if __name__ == "__main__":
    # CartPole-style dimensions: input_dims=4, n_actions=2, hidden=256 (fixed
    # by the module).  Small, non-multiple-of-8 batch to exercise the padding
    # + slicing path of the wrapper.
    B, D_IN, HIDDEN, N_ACTIONS = 33, 4, 256, 2

    key = jax.random.PRNGKey(0)
    k_x, k_p = jax.random.split(key)
    state = jax.random.normal(k_x, (B, D_IN), jnp.float32)
    w1, b1, w2, b2 = init_params(k_p, D_IN, HIDDEN, N_ACTIONS)
    w1_p, b1_p, w2_pad, b2_pad, A = prepare_params(w1, b1, w2, b2)

    actions = linear_dqn_forward(state, w1_p, b1_p, w2_pad, b2_pad, n_actions=A)
    jax.block_until_ready(actions)

    # Reference 1: same numerics as the kernel (bf16 fc2 inputs, f32 accumulate).
    h_ref = jnp.maximum(state @ w1 + b1, 0.0)
    ref_bf16 = jnp.dot(h_ref.astype(jnp.bfloat16), w2.astype(jnp.bfloat16),
                       preferred_element_type=jnp.float32) + b2
    # Reference 2: pure-f32 math (loose tolerance for bf16 input rounding).
    ref_f32 = h_ref @ w2 + b2

    assert actions.shape == (B, N_ACTIONS)
    assert jnp.allclose(actions, ref_bf16, atol=1e-3, rtol=1e-3)
    assert jnp.allclose(actions, ref_f32, atol=5e-2, rtol=5e-2)

    # TODO(synk): training machinery (Adam optimizer, MSELoss) is not part of
    # forward() and is left to the host-side JAX training loop.
    print("KERNEL_OK")
</pallas_src>

<mosaic_0001>
module attributes {stable_mosaic.version = 11 : i64} {
  func.func @dqn_kernel(%arg0: i32, %arg1: memref<40x4xf32, #tpu.memory_space<vmem>>, %arg2: memref<4x256xf32, #tpu.memory_space<vmem>>, %arg3: memref<1x256xf32, #tpu.memory_space<vmem>>, %arg4: memref<256x128xbf16, #tpu.memory_space<vmem>>, %arg5: memref<1x128xf32, #tpu.memory_space<vmem>>, %arg6: memref<40x128xf32, #tpu.memory_space<vmem>>) attributes {dimension_semantics = [#tpu.dimension_semantics<parallel>], iteration_bounds = array<i64: 1>, scalar_prefetch = 0 : i64, scratch_operands = 0 : i64, tpu.core_type = #tpu.core_type<tc>, window_params = [{transform_indices = @transform_0, window_bounds = array<i64: 40, 4>}, {pipeline_mode = #tpu.pipeline_mode<synchronous>, transform_indices = @transform_1, window_bounds = array<i64: 4, 256>}, {pipeline_mode = #tpu.pipeline_mode<synchronous>, transform_indices = @transform_2, window_bounds = array<i64: 1, 256>}, {pipeline_mode = #tpu.pipeline_mode<synchronous>, transform_indices = @transform_3, window_bounds = array<i64: 256, 128>}, {pipeline_mode = #tpu.pipeline_mode<synchronous>, transform_indices = @transform_4, window_bounds = array<i64: 1, 128>}, {transform_indices = @transform_5, window_bounds = array<i64: 40, 128>}]} {
    %c0 = arith.constant 0 : index
    %c0_0 = arith.constant 0 : index
    %0 = vector.load %arg1[%c0, %c0_0] : memref<40x4xf32, #tpu.memory_space<vmem>>, vector<40x4xf32>
    %1 = vector.extract_strided_slice %0 {offsets = [0, 0], sizes = [40, 1], strides = [1, 1]} : vector<40x4xf32> to vector<40x1xf32>
    %c0_1 = arith.constant 0 : index
    %c0_2 = arith.constant 0 : index
    %2 = vector.load %arg2[%c0_1, %c0_2] : memref<4x256xf32, #tpu.memory_space<vmem>>, vector<1x256xf32>
    %3 = vector.broadcast %1 : vector<40x1xf32> to vector<40x256xf32>
    %4 = vector.broadcast %2 : vector<1x256xf32> to vector<40x256xf32>
    %5 = arith.mulf %3, %4 : vector<40x256xf32>
    %6 = vector.extract_strided_slice %0 {offsets = [0, 1], sizes = [40, 1], strides = [1, 1]} : vector<40x4xf32> to vector<40x1xf32>
    %c1 = arith.constant 1 : index
    %c0_3 = arith.constant 0 : index
    %7 = vector.load %arg2[%c1, %c0_3] : memref<4x256xf32, #tpu.memory_space<vmem>>, vector<1x256xf32>
    %8 = vector.broadcast %6 : vector<40x1xf32> to vector<40x256xf32>
    %9 = vector.broadcast %7 : vector<1x256xf32> to vector<40x256xf32>
    %10 = arith.mulf %8, %9 : vector<40x256xf32>
    %11 = arith.addf %5, %10 : vector<40x256xf32>
    %12 = vector.extract_strided_slice %0 {offsets = [0, 2], sizes = [40, 1], strides = [1, 1]} : vector<40x4xf32> to vector<40x1xf32>
    %c2 = arith.constant 2 : index
    %c0_4 = arith.constant 0 : index
    %13 = vector.load %arg2[%c2, %c0_4] : memref<4x256xf32, #tpu.memory_space<vmem>>, vector<1x256xf32>
    %14 = vector.broadcast %12 : vector<40x1xf32> to vector<40x256xf32>
    %15 = vector.broadcast %13 : vector<1x256xf32> to vector<40x256xf32>
    %16 = arith.mulf %14, %15 : vector<40x256xf32>
    %17 = arith.addf %11, %16 : vector<40x256xf32>
    %18 = vector.extract_strided_slice %0 {offsets = [0, 3], sizes = [40, 1], strides = [1, 1]} : vector<40x4xf32> to vector<40x1xf32>
    %c3 = arith.constant 3 : index
    %c0_5 = arith.constant 0 : index
    %19 = vector.load %arg2[%c3, %c0_5] : memref<4x256xf32, #tpu.memory_space<vmem>>, vector<1x256xf32>
    %20 = vector.broadcast %18 : vector<40x1xf32> to vector<40x256xf32>
    %21 = vector.broadcast %19 : vector<1x256xf32> to vector<40x256xf32>
    %22 = arith.mulf %20, %21 : vector<40x256xf32>
    %23 = arith.addf %17, %22 : vector<40x256xf32>
    %c0_6 = arith.constant 0 : index
    %c0_7 = arith.constant 0 : index
    %24 = vector.load %arg3[%c0_6, %c0_7] : memref<1x256xf32, #tpu.memory_space<vmem>>, vector<1x256xf32>
    %25 = vector.broadcast %24 : vector<1x256xf32> to vector<40x256xf32>
    %26 = arith.addf %23, %25 : vector<40x256xf32>
    %cst = arith.constant 0.000000e+00 : f32
    %27 = vector.broadcast %cst : f32 to vector<40x256xf32>
    %28 = arith.maximumf %26, %27 : vector<40x256xf32>
    %29 = arith.truncf %28 : vector<40x256xf32> to vector<40x256xbf16>
    %c0_8 = arith.constant 0 : index
    %c0_9 = arith.constant 0 : index
    %30 = vector.load %arg4[%c0_8, %c0_9] : memref<256x128xbf16, #tpu.memory_space<vmem>>, vector<256x128xbf16>
    %cst_10 = arith.constant dense<0.000000e+00> : vector<40x128xf32>
    %31 = tpu.matmul %29, %30, %cst_10 {dimension_numbers = #tpu.dot_dimension_numbers<[1], [0], [0], [1], [0, 0, 1, 1], [], []>} : vector<40x256xbf16>, vector<256x128xbf16>, vector<40x128xf32> -> vector<40x128xf32>
    %c0_11 = arith.constant 0 : index
    %c0_12 = arith.constant 0 : index
    %32 = vector.load %arg5[%c0_11, %c0_12] : memref<1x128xf32, #tpu.memory_space<vmem>>, vector<1x128xf32>
    %33 = vector.broadcast %32 : vector<1x128xf32> to vector<40x128xf32>
    %34 = arith.addf %31, %33 : vector<40x128xf32>
    %c0_13 = arith.constant 0 : index
    %c0_14 = arith.constant 0 : index
    %35 = vector.load %arg6[%c0_13, %c0_14] : memref<40x128xf32, #tpu.memory_space<vmem>>, vector<40x128xf32>
    tpu.vector_store %arg6[%c0_13, %c0_14], %34 {strides = array<i32>} : memref<40x128xf32, #tpu.memory_space<vmem>>, vector<40x128xf32>,
    return
  }
  func.func @transform_0(%arg0: i32) -> (i32, i32) {
    %c0_i32 = arith.constant 0 : i32
    %c0_i32_0 = arith.constant 0 : i32
    return %arg0, %c0_i32 : i32, i32
  }
  func.func @transform_1(%arg0: i32) -> (i32, i32) {
    %c0_i32 = arith.constant 0 : i32
    %c0_i32_0 = arith.constant 0 : i32
    %c0_i32_1 = arith.constant 0 : i32
    return %c0_i32, %c0_i32_0 : i32, i32
  }
  func.func @transform_2(%arg0: i32) -> (i32, i32) {
    %c0_i32 = arith.constant 0 : i32
    %c0_i32_0 = arith.constant 0 : i32
    %c0_i32_1 = arith.constant 0 : i32
    return %c0_i32, %c0_i32_0 : i32, i32
  }
  func.func @transform_3(%arg0: i32) -> (i32, i32) {
    %c0_i32 = arith.constant 0 : i32
    %c0_i32_0 = arith.constant 0 : i32
    %c0_i32_1 = arith.constant 0 : i32
    return %c0_i32, %c0_i32_0 : i32, i32
  }
  func.func @transform_4(%arg0: i32) -> (i32, i32) {
    %c0_i32 = arith.constant 0 : i32
    %c0_i32_0 = arith.constant 0 : i32
    %c0_i32_1 = arith.constant 0 : i32
    return %c0_i32, %c0_i32_0 : i32, i32
  }
  func.func @transform_5(%arg0: i32) -> (i32, i32) {
    %c0_i32 = arith.constant 0 : i32
    %c0_i32_0 = arith.constant 0 : i32
    return %arg0, %c0_i32 : i32, i32
  }
}

</mosaic_0001>

<bundles_post_ra>
// kernel: linear_dqn_forward.1
= control target key start
LH: loop header
LB: loop body
LE: loop exit
PB: predicated region body
PF: predicated region fallthrough
CT: control target
= control target key end

     0   :  { %10 = vsyncpa [#allocation3], 0  ;;  %s611_s18 = smov [#allocation2]   ;;  %s842_s0 = inlined_call_operand.vmem [shape: f32[40,4], index: 0, kind: input, shape index: {}]   ;;  %s843_s1 = inlined_call_operand.vmem [shape: f32[4,256], index: 1, kind: input, shape index: {}]   ;;  %s844_s2 = inlined_call_operand.hbm [shape: f32[1,256], index: 2, kind: input, shape index: {}]   ;;  %s845_s3 = inlined_call_operand.vmem [shape: bf16[256,128], index: 3, kind: input, shape index: {}]   ;;  %s846_s4 = inlined_call_operand.vmem [shape: f32[1,128], index: 4, kind: input, shape index: {}]   ;;  %s847_s5 = inlined_call_operand.vmem [shape: f32[40,128], index: 5, kind: output, shape index: {}]  }
   0x1   :  { %s21_s19 = sshll.u32 %s611_s18, 4  ;;  %s587_s22 = scalar_lea.hbm %s844_s2, 32  ;;  %s22_s19 = int_to_ptr.vmem [resolvable:$true] %s21_s19 }
   0x2   :  { %p588_p0 = scmp.ne.s32.totalorder %s844_s2, %s587_s22  ;;  %p591_p1 = scmp.lt.u32.totalorder %s587_s22, %s844_s2 }
   0x4   :  { %p593_p2 = pnand %p591_p1, %p588_p0 }
   0x6   :  { %596 = shalt.err (!%p593_p2)
}
   0x7   :  { %s597_s27 = scalar_lea.vmem %s22_s19, 32  ;;  %p602_p4 = scmp.lt.s32.totalorder %s22_s19, %s22_s19 }
   0x8   :  { %p598_p3 = scmp.ne.s32.totalorder %s22_s19, %s597_s27  ;;  %p603_p5 = scmp.lt.s32.totalorder %s597_s27, %s597_s27 }
   0xa   :  { %p604_p6 = por %p603_p5, %p602_p4 }
   0xc   :  { %p605_p7 = pnand %p604_p6, %p598_p3 }
   0xe   :  { %608 = shalt.err (!%p605_p7)
}
   0xf   :  { %24 = dma.hbm_to_vmem [thread:$0]  %s844_s2, 32, %s22_s19, [#allocation3]  }
  0x10   :  { %609 = dma.done.wait [#allocation3], 32  }
  0x11   :  { %610 = vsyncadd [#allocation3], 4294967264  ;;  %v612_v0 = vmov 1   ;;  %v613_v1 = vmov 0   ;;  %v35_v2 = vld [vmem:[%s842_s0 + $0x10] sm:$0xff]  ;;  %v36_v3 = vld [vmem:[%s842_s0 + $0x18] sm:$0xff]  ;;  %v65_v25 = vlaneseq }
  0x12   :  { %559 = vset.pattern.permute.xlu1 %v612_v0  ;;  %558 = vset.pattern.permute.xlu0 %v613_v1  ;;  %v571_v4 = vld [vmem:[%s845_s3 + $0x40] sm:$0xff]   ;;  %v573_v6 = vld [vmem:[%s845_s3 + $0x48] sm:$0xff]   ;;  %v614_v8 = vmov 2   ;;  %v615_v9 = vmov 3   ;;  %v575_v10 = vld [vmem:[%s845_s3 + $0x50] sm:$0xff]  }
  0x13   :  { %96 = vperm.xlu1 %559, %v35_v2   ;;  %51 = vperm.xlu0 %558, %v35_v2   ;;  %v572_v5 = vld [vmem:[%s845_s3] sm:$0xff]   ;;  %v574_v7 = vld [vmem:[%s845_s3 + $0x8] sm:$0xff]   ;;  %v576_v12 = vld [vmem:[%s845_s3 + $0x10] sm:$0xff]   ;;  %v66_v28 = vshrl.u32 %v65_v25, 7 }
  0x14   :  { %537 = vmatprep.subr.bf16.mxu1 %v571_v4  ;;  %503 = vmatprep.subr.bf16.mxu0 %v571_v4  ;;  %v33_v11 = vld [vmem:[%s842_s0] sm:$0xff]  ;;  %v577_v14 = vld [vmem:[%s845_s3 + $0x58] sm:$0xff]   ;;  %v34_v17 = vld [vmem:[%s842_s0 + $0x8] sm:$0xff] }
  0x15   :  { %545 = vmatpush3.bf16.msra.mxu1 %v572_v5  ;;  %504 = vmatpush3.bf16.msra.mxu0 %v572_v5  ;;  %v37_v13 = vld [vmem:[%s842_s0 + $0x20] sm:$0xff]  ;;  %v578_v15 = vld [vmem:[%s845_s3 + $0x18] sm:$0xff]   ;;  %v581_v19 = vld [vmem:[%s845_s3 + $0x68] sm:$0xff]   ;;  %v67_v31 = vsub.s32 0, %v66_v28  ;;  %v71_v32 = vsub.s32 1, %v66_v28 }
  0x16   :  { %538 = vmatprep.subr.bf16.mxu1 %v573_v6  ;;  %505 = vmatprep.subr.bf16.mxu0 %v573_v6  ;;  %v579_v16 = vld [vmem:[%s845_s3 + $0x60] sm:$0xff]   ;;  %v582_v20 = vld [vmem:[%s845_s3 + $0x28] sm:$0xff]   ;;  %v583_v21 = vld [vmem:[%s845_s3 + $0x70] sm:$0xff]  }
  0x17   :  { %100 = vperm.xlu1 %559, %v36_v3   ;;  %56 = vperm.xlu0 %558, %v36_v3   ;;  %v580_v18 = vld [vmem:[%s845_s3 + $0x20] sm:$0xff]   ;;  %v584_v22 = vld [vmem:[%s845_s3 + $0x30] sm:$0xff]   ;;  %v585_v23 = vld [vmem:[%s845_s3 + $0x78] sm:$0xff]  }
  0x18   :  { %v586_v24 = vld [vmem:[%s845_s3 + $0x38] sm:$0xff]   ;;  %v483_v33 = vld [vmem:[%s843_s1 + $0x1] ss:$4 sm:$0x3] }
  0x19   :  { %546 = vmatpush3.bf16.msra.mxu1 %v574_v7  ;;  %506 = vmatpush3.bf16.msra.mxu0 %v574_v7  ;;  %v38_v34 = vld [vmem:[%s843_s1] ss:$4 sm:$0x3]  ;;  %v484_v35 = vld [vmem:[%s843_s1 + $0x2] ss:$4 sm:$0x3]  ;;  %v743_v38 = vrot.slane %v483_v33, %v67_v31  ;;  %v745_v39 = vrot.slane %v483_v33, %v71_v32 }
  0x1a   :  { %539 = vmatprep.subr.bf16.mxu1 %v575_v10  ;;  %507 = vmatprep.subr.bf16.mxu0 %v575_v10  ;;  %v747_v40 = vrot.slane %v38_v34, %v67_v31  ;;  %v749_v41 = vrot.slane %v38_v34, %v71_v32  ;;  %v751_v42 = vrot.slane %v484_v35, %v67_v31  ;;  %v485_v44 = vld [vmem:[%s843_s1 + $0x3] ss:$4 sm:$0x3] }
  0x1b   :  { %560 = vset.pattern.permute.xlu1 %v614_v8  ;;  %562 = vset.pattern.permute.xlu0 %v615_v9  ;;  %v753_v43 = vrot.slane %v484_v35, %v71_v32  ;;  %v766_v53 = vrot.slane %v485_v44, %v67_v31  ;;  %v768_v54 = vrot.slane %v485_v44, %v71_v32 }
  0x1c   :  { %153 = vperm.xlu1 %560, %v36_v3   ;;  %206 = vperm.xlu0 %562, %v36_v3  }
  0x1d   :  { %547 = vmatpush3.bf16.msra.mxu1 %v576_v12  ;;  %508 = vmatpush3.bf16.msra.mxu0 %v576_v12 }
  0x1e   :  { %540 = vmatprep.subr.bf16.mxu1 %v577_v14  ;;  %509 = vmatprep.subr.bf16.mxu0 %v577_v14 }
  0x20   :  { %561 = vset.pattern.permute.xlu1 %v615_v9  ;;  %564 = vset.pattern.permute.xlu0 %v612_v0 }
  0x21   :  { %202 = vperm.xlu1 %561, %v35_v2   ;;  %88 = vperm.xlu0 %564, %v33_v11  }
  0x22   :  { %548 = vmatpush3.bf16.msra.mxu1 %v578_v15  ;;  %510 = vmatpush3.bf16.msra.mxu0 %v578_v15 }
  0x23   :  { %541 = vmatprep.subr.bf16.mxu1 %v579_v16  ;;  %511 = vmatprep.subr.bf16.mxu0 %v579_v16 }
  0x25   :  { %563 = vset.pattern.permute.xlu1 %v613_v1  ;;  %104 = vperm.xlu0 %564, %v37_v13  }
  0x26   :  { %41 = vperm.xlu1 %563, %v33_v11   ;;  %549 = vmatpush3.bf16.msra.mxu1 %v580_v18 }
  0x27   :  { %512 = vmatpush3.bf16.msra.mxu0 %v580_v18  ;;  %542 = vmatprep.subr.bf16.mxu1 %v581_v19 }
  0x28   :  { %513 = vmatprep.subr.bf16.mxu0 %v581_v19 }
  0x29   :  { %567 = vset.pattern.permute.xlu0 %v614_v8 }
  0x2a   :  { %149 = vperm.xlu0 %567, %v35_v2   ;;  %46 = vperm.xlu1 %563, %v34_v17  }
  0x2b   :  { %550 = vmatpush3.bf16.msra.mxu1 %v582_v20  ;;  %514 = vmatpush3.bf16.msra.mxu0 %v582_v20 }
  0x2c   :  { %543 = vmatprep.subr.bf16.mxu1 %v583_v21  ;;  %515 = vmatprep.subr.bf16.mxu0 %v583_v21 }
  0x2e   :  { %145 = vperm.xlu0 %567, %v34_v17   ;;  %565 = vset.pattern.permute.xlu1 %v612_v0 }
  0x2f   :  { %92 = vperm.xlu1 %565, %v34_v17   ;;  %551 = vmatpush3.bf16.msra.mxu1 %v584_v22 }
  0x30   :  { %544 = vmatprep.subr.bf16.mxu1 %v585_v23  ;;  %516 = vmatpush3.bf16.msra.mxu0 %v584_v22 }
  0x31   :  { %517 = vmatprep.subr.bf16.mxu0 %v585_v23 }
  0x32   :  { %570 = vset.pattern.permute.xlu0 %v615_v9 }
  0x33   :  { %198 = vperm.xlu0 %570, %v34_v17   ;;  %566 = vset.pattern.permute.xlu1 %v613_v1  ;;  %v244_v1 = vld [vmem:[#allocation2] sm:$0x3] }
  0x34   :  { %61 = vperm.xlu1 %566, %v37_v13   ;;  %552 = vmatpush3.bf16.msra.mxu1 %v586_v24  ;;  %v778_v6 = vrot.slane %v244_v1, %v67_v31 }
  0x35   :  { %518 = vmatpush3.bf16.msra.mxu0 %v586_v24 }
  0x38   :  { %568 = vset.pattern.permute.xlu1 %v614_v8 }
  0x39   :  { %141 = vperm.xlu1 %568, %v33_v11  }
  0x3d   :  { %157 = vperm.xlu1 %568, %v37_v13  }
  0x41   :  { %569 = vset.pattern.permute.xlu1 %v615_v9  ;;  %v780_v9 = vrot.slane %v244_v1, %v71_v32 }
  0x42   :  { %194 = vperm.xlu1 %569, %v33_v11  }
  0x46   :  { %210 = vperm.xlu1 %569, %v37_v13  }
  0x92   :  { %v97_v26 = vpop.permute.xlu1 %96  ;;  %v52_v27 = vpop.permute.xlu0 %51 }
  0x93   :  { %v122_v58 = vmul.f32 %v743_v38, %v97_v26  ;;  %v123_v59 = vmul.f32 %v745_v39, %v97_v26  ;;  %v79_v60 = vmul.f32 %v747_v40, %v52_v27  ;;  %v80_v61 = vmul.f32 %v749_v41, %v52_v27 }
  0x95   :  { %v132_v4 = vadd.f32 %v122_v58, %v79_v60  ;;  %v133_v5 = vadd.f32 %v123_v59, %v80_v61 }
  0x96   :  { %v101_v29 = vpop.permute.xlu1 %100  ;;  %v57_v30 = vpop.permute.xlu0 %56 }
  0x97   :  { %v124_v45 = vmul.f32 %v743_v38, %v101_v29  ;;  %v125_v46 = vmul.f32 %v745_v39, %v101_v29  ;;  %v81_v47 = vmul.f32 %v747_v40, %v57_v30  ;;  %v82_v48 = vmul.f32 %v749_v41, %v57_v30 }
  0x99   :  { %v134_v55 = vadd.f32 %v124_v45, %v81_v47  ;;  %v135_v56 = vadd.f32 %v125_v46, %v82_v48 }
  0x9b   :  { %v154_v36 = vpop.permute.xlu1 %153  ;;  %v207_v37 = vpop.permute.xlu0 %206 }
  0x9c   :  { %v177_v51 = vmul.f32 %v751_v42, %v154_v36  ;;  %v178_v52 = vmul.f32 %v753_v43, %v154_v36  ;;  %v230_v2 = vmul.f32 %v766_v53, %v207_v37  ;;  %v231_v3 = vmul.f32 %v768_v54, %v207_v37 }
  0x9e   :  { %v187_v63 = vadd.f32 %v177_v51, %v134_v55  ;;  %v188_v0 = vadd.f32 %v178_v52, %v135_v56 }
  0xa0   :  { %v203_v49 = vpop.permute.xlu1 %202  ;;  %v762_v50 = vpop.permute.xlu0 %88  ;;  %v240_v10 = vadd.f32 %v230_v2, %v187_v63  ;;  %v241_v11 = vadd.f32 %v231_v3, %v188_v0 }
  0xa1   :  { %v228_v14 = vmul.f32 %v766_v53, %v203_v49  ;;  %v229_v15 = vmul.f32 %v768_v54, %v203_v49  ;;  %v118_v56 = vmul.f32 %v743_v38, %v762_v50  ;;  %v119_v58 = vmul.f32 %v745_v39, %v762_v50 }
  0xa2   :  { %v262_v18 = vadd.f32 %v778_v6, %v240_v10  ;;  %v263_v22 = vadd.f32 %v780_v9, %v241_v11 }
  0xa4   :  { %v770_v57 = vpop.permute.xlu0 %104  ;;  %v273_v27 = vmax.f32 %v263_v22, 0.0  ;;  %v272_v29 = vmax.f32 %v262_v18, 0.0 }
  0xa5   :  { %v42_v62 = vpop.permute.xlu1 %41  ;;  %v126_v50 = vmul.f32 %v743_v38, %v770_v57 }
  0xa6   :  { %v75_v59 = vmul.f32 %v747_v40, %v42_v62  ;;  %v76_v60 = vmul.f32 %v749_v41, %v42_v62 }
  0xa9   :  { %v150_v7 = vpop.permute.xlu0 %149  ;;  %v47_v8 = vpop.permute.xlu1 %46 }
  0xaa   :  { %v175_v12 = vmul.f32 %v751_v42, %v150_v7  ;;  %v176_v13 = vmul.f32 %v753_v43, %v150_v7  ;;  %v77_v35 = vmul.f32 %v747_v40, %v47_v8  ;;  %v78_v36 = vmul.f32 %v749_v41, %v47_v8 }
  0xab   :  { %v129_v7 = vadd.f32 %v119_v58, %v76_v60  ;;  %v127_v8 = vmul.f32 %v745_v39, %v770_v57 }
  0xac   :  { %v185_v16 = vadd.f32 %v175_v12, %v132_v4  ;;  %v186_v17 = vadd.f32 %v176_v13, %v133_v5  ;;  %v128_v5 = vadd.f32 %v118_v56, %v75_v59 }
  0xad   :  { %v146_v25 = vpop.permute.xlu0 %145 }
  0xae   :  { %v238_v19 = vadd.f32 %v228_v14, %v185_v16  ;;  %v93_v20 = vpop.permute.xlu1 %92  ;;  %v239_v21 = vadd.f32 %v229_v15, %v186_v17  ;;  %v173_v37 = vmul.f32 %v751_v42, %v146_v25  ;;  %v174_v44 = vmul.f32 %v753_v43, %v146_v25 }
  0xaf   :  { %v120_v30 = vmul.f32 %v743_v38, %v93_v20  ;;  %v121_v31 = vmul.f32 %v745_v39, %v93_v20 }
  0xb0   :  { %v261_v23 = vadd.f32 %v780_v9, %v239_v21  ;;  %v260_v24 = vadd.f32 %v778_v6, %v238_v19 }
  0xb1   :  { %v130_v45 = vadd.f32 %v120_v30, %v77_v35  ;;  %v131_v46 = vadd.f32 %v121_v31, %v78_v36  ;;  %v486_v35 = vld [vmem:[%s846_s4] ss:$0 sm:$0xff] }
  0xb2   :  { %v271_v26 = vmax.f32 %v261_v23, 0.0  ;;  %v270_v28 = vmax.f32 %v260_v24, 0.0  ;;  %v199_v47 = vpop.permute.xlu0 %198 }
  0xb3   :  { %v62_v32 = vpop.permute.xlu1 %61  ;;  %v183_v49 = vadd.f32 %v173_v37, %v130_v45  ;;  %v184_v51 = vadd.f32 %v174_v44, %v131_v46  ;;  %v226_v52 = vmul.f32 %v766_v53, %v199_v47  ;;  %v227_v55 = vmul.f32 %v768_v54, %v199_v47 }
  0xb4   :  { %v279_v33 = vpack.c.bf16 %v273_v27, %v271_v26  ;;  %v278_v34 = vpack.c.bf16 %v272_v29, %v270_v28  ;;  %v83_v3 = vmul.f32 %v747_v40, %v62_v32  ;;  %v84_v4 = vmul.f32 %v749_v41, %v62_v32 }
  0xb5   :  { %v236_v1 = vadd.f32 %v226_v52, %v183_v49  ;;  %v237_v2 = vadd.f32 %v227_v55, %v184_v51 }
  0xb6   :  { %457 = vmatprep.mubr.bf16.mxu1 %v279_v33  ;;  %v136_v15 = vadd.f32 %v126_v50, %v83_v3  ;;  %v137_v16 = vadd.f32 %v127_v8, %v84_v4 }
  0xb7   :  { %458 = vmatmul.mubr.bf16.vlgmr.msra.gmra.mrb[0].mxu1 %v278_v34  ;;  %v258_v41 = vadd.f32 %v778_v6, %v236_v1  ;;  %v259_v38 = vadd.f32 %v780_v9, %v237_v2 }
  0xb8   :  { %v142_v48 = vpop.permute.xlu1 %141 }
  0xb9   :  { %v171_v63 = vmul.f32 %v751_v42, %v142_v48  ;;  %v172_v0 = vmul.f32 %v753_v43, %v142_v48  ;;  %v268_v22 = vmax.f32 %v258_v41, 0.0  ;;  %v269_v23 = vmax.f32 %v259_v38, 0.0 }
  0xbb   :  { %v181_v12 = vadd.f32 %v171_v63, %v128_v5  ;;  %v182_v13 = vadd.f32 %v172_v0, %v129_v7 }
  0xbc   :  { %v158_v61 = vpop.permute.xlu1 %157 }
  0xbd   :  { %v179_v62 = vmul.f32 %v751_v42, %v158_v61  ;;  %v180_v10 = vmul.f32 %v753_v43, %v158_v61 }
  0xbf   :  { %v189_v39 = vadd.f32 %v179_v62, %v136_v15  ;;  %v190_v57 = vadd.f32 %v180_v10, %v137_v16 }
  0xc1   :  { %v195_v11 = vpop.permute.xlu1 %194 }
  0xc2   :  { %v224_v14 = vmul.f32 %v766_v53, %v195_v11  ;;  %v225_v40 = vmul.f32 %v768_v54, %v195_v11 }
  0xc4   :  { %v234_v17 = vadd.f32 %v224_v14, %v181_v12  ;;  %v235_v18 = vadd.f32 %v225_v40, %v182_v13 }
  0xc5   :  { %v211_v42 = vpop.permute.xlu1 %210 }
  0xc6   :  { %v256_v43 = vadd.f32 %v778_v6, %v234_v17  ;;  %v232_v19 = vmul.f32 %v766_v53, %v211_v42  ;;  %v233_v20 = vmul.f32 %v768_v54, %v211_v42  ;;  %v257_v21 = vadd.f32 %v780_v9, %v235_v18 }
  0xc8   :  { %v242_v24 = vadd.f32 %v232_v19, %v189_v39  ;;  %v243_v25 = vadd.f32 %v233_v20, %v190_v57  ;;  %v267_v26 = vmax.f32 %v257_v21, 0.0  ;;  %v266_v27 = vmax.f32 %v256_v43, 0.0 }
  0xca   :  { %v264_v28 = vadd.f32 %v778_v6, %v242_v24  ;;  %v265_v29 = vadd.f32 %v780_v9, %v243_v25  ;;  %v277_v30 = vpack.c.bf16 %v269_v23, %v267_v26  ;;  %v276_v31 = vpack.c.bf16 %v268_v22, %v266_v27 }
  0xcc   :  { %449 = vmatprep.mubr.bf16.mxu0 %v277_v30  ;;  %v275_v32 = vmax.f32 %v265_v29, 0.0  ;;  %v274_v33 = vmax.f32 %v264_v28, 0.0 }
  0xcd   :  { %450 = vmatmul.mubr.bf16.vlgmr.msra.gmra.mrb[0].mxu0 %v276_v31 }
  0xce   :  { %v281_v53 = vpack.c.bf16 %v275_v32, %v275_v32  ;;  %v280_v54 = vpack.c.bf16 %v274_v33, %v274_v33 }
  0xd0   :  { %465 = vmatprep.mubr.bf16.mxu1 %v281_v53 }
  0xd1   :  { %466 = vmatmul.mubr.bf16.gmra.mrb[4].mxu1 %v280_v54 }
 0x18a   :  { %v525_v34 = vpop.f32.mrb[0].mxu1 }
 0x18b   :  { %v526_v36 = vpop.f32.mrb[1].mxu1 }
 0x18c   :  { %v527_v37 = vadd.f32 %v526_v36, %v525_v34  ;;  %v528_v6 = vpop.f32.mrb[2].mxu1 }
 0x18d   :  { %v529_v44 = vpop.f32.mrb[3].mxu1 }
 0x18e   :  { %v460_v9 = vadd.f32 %v527_v37, %v486_v35  ;;  %v530_v45 = vadd.f32 %v529_v44, %v528_v6 }
 0x190   :  { %475 = vst [vmem:[%s847_s5 + $0x10] sm:$0xff] %v460_v9  ;;  %v463_v46 = vadd.f32 %v530_v45, %v486_v35 }
 0x192   :  { %476 = vst [vmem:[%s847_s5 + $0x18] sm:$0xff] %v463_v46 }
 0x1a0   :  { %v519_v47 = vpop.f32.mrb[0].mxu0 }
 0x1a1   :  { %v520_v48 = vpop.f32.mrb[1].mxu0 }
 0x1a2   :  { %v521_v49 = vadd.f32 %v520_v48, %v519_v47  ;;  %v522_v51 = vpop.f32.mrb[2].mxu0 }
 0x1a3   :  { %v523_v52 = vpop.f32.mrb[3].mxu0 }
 0x1a4   :  { %v452_v55 = vadd.f32 %v521_v49, %v486_v35  ;;  %v524_v56 = vadd.f32 %v523_v52, %v522_v51  ;;  %v531_v58 = vpop.f32.mrb[4].mxu1 }
 0x1a5   :  { %v532_v59 = vpop.f32.mrb[5].mxu1 }
 0x1a6   :  { %473 = vst [vmem:[%s847_s5] sm:$0xff] %v452_v55  ;;  %v455_v60 = vadd.f32 %v524_v56, %v486_v35  ;;  %v533_v61 = vadd.f32 %v532_v59, %v531_v58  ;;  %v534_v63 = vpop.f32.mrb[6].mxu1 }
 0x1a7   :  { %v535_v0 = vpop.f32.mrb[7].mxu1 }
 0x1a8   :  { %474 = vst [vmem:[%s847_s5 + $0x8] sm:$0xff] %v455_v60  ;;  %v468_v1 = vadd.f32 %v533_v61, %v486_v35 }
 0x1aa   :  { %477 = vst [vmem:[%s847_s5 + $0x20] sm:$0xff] %v468_v1 }
 0x1ab   :  { %482 = vsyncpa [#allocation3], 1 }

</bundles_post_ra>
